<compile_context>
chip_gen: v5e
topology: v5e:2x2
jax: 0.10.0
libtpu: 0.0.40
codegen_flags: <defaults>
</compile_context>

<pallas_src>
import functools

import jax
import jax.numpy as jnp
from jax.experimental import pallas as pl
from jax.experimental.pallas import tpu as pltpu


_LANE = 128      # lane (last-dim) alignment for per-layer output features
_SUBLANE = 8     # sublane (second-to-last-dim) alignment


def _round_up(n: int, m: int) -> int:
    return ((n + m - 1) // m) * m


def _vmem_limit_bytes(estimate: int) -> int:
    """Generation-aware VMEM cap, leaving headroom for compiler scratch."""
    try:
        cap = int(pltpu.get_tpu_info().vmem_capacity_bytes)
    except Exception:
        cap = 64 * 1024 * 1024            # v7x per-TC physical floor
    want = max(2 * int(estimate), 32 * 1024 * 1024)
    return int(min(want, (cap * 3) // 4))


def _fnn_layer_kernel(*refs, n_layers: int, has_hidden: bool, w_dtype):
    """One grid step == one linear layer of the FNN.

    Grid = (batch_tiles, n_layers); the layer axis is innermost ("arbitrary"),
    so the per-layer [Hp, Hp] hidden weight is double-buffered by the Pallas
    pipeline while the activation stays resident in the f32 VMEM scratch.
    """
    if has_hidden:
        (x_ref, w_in_ref, b_in_ref, w_hid_ref, b_hid_ref,
         w_out_ref, b_out_ref, o_ref, h_ref) = refs
    else:
        (x_ref, w_in_ref, b_in_ref,
         w_out_ref, b_out_ref, o_ref, h_ref) = refs
        w_hid_ref = b_hid_ref = None

    layer = pl.program_id(1)

    # Input layer: h = ReLU(x @ W_in + b_in)   (bf16 operands, f32 accumulation)
    @pl.when(layer == 0)
    def _input_layer():
        y = jnp.dot(x_ref[...], w_in_ref[...],
                    preferred_element_type=jnp.float32)
        h_ref[...] = jnp.maximum(y + b_in_ref[...], 0.0)

    # Hidden layers: h = ReLU(h @ W_hid[layer-1] + b_hid[layer-1])
    if has_hidden:
        @pl.when(jnp.logical_and(layer > 0, layer < n_layers - 1))
        def _hidden_layer():
            a = h_ref[...].astype(w_dtype)
            y = jnp.dot(a, w_hid_ref[0], preferred_element_type=jnp.float32)
            h_ref[...] = jnp.maximum(y + b_hid_ref[0], 0.0)

    # Output layer (no activation): o = h @ W_out + b_out
    @pl.when(layer == n_layers - 1)
    def _output_layer():
        a = h_ref[...].astype(w_dtype)
        y = jnp.dot(a, w_out_ref[...], preferred_element_type=jnp.float32)
        o_ref[...] = (y + b_out_ref[...]).astype(o_ref.dtype)


def _fnn_pallas(x_pad, w_in, b_in, w_hid, b_hid, w_out, b_out, *,
                batch_tile: int, n_hidden: int):
    Bp, Ip = x_pad.shape
    Hp = w_in.shape[1]
    Op = w_out.shape[1]
    n_layers = n_hidden + 2          # input + (num_hidden_layers-1) hidden + output
    has_hidden = n_hidden > 0
    num_b = Bp // batch_tile
    wbytes = jnp.dtype(w_in.dtype).itemsize

    kernel = functools.partial(_fnn_layer_kernel, n_layers=n_layers,
                               has_hidden=has_hidden, w_dtype=w_in.dtype)

    in_specs = [
        # x is consumed at layer 0 only; constant block index across the layer
        # axis => fetched once per batch tile.
        pl.BlockSpec((batch_tile, Ip), lambda b, l: (b, 0)),
        # Input-layer weight / bias: VMEM-resident across the whole grid.
        pl.BlockSpec((Ip, Hp), lambda b, l: (0, 0)),
        pl.BlockSpec((1, Hp), lambda b, l: (0, 0)),
    ]
    operands = [x_pad, w_in, b_in]

    est = (batch_tile * Ip * jnp.dtype(x_pad.dtype).itemsize
           + Ip * Hp * wbytes + Hp * Op * wbytes
           + batch_tile * Hp * 4 + batch_tile * Op * 4
           + 2 * Hp * 4 + 2 * Op * 4)

    if has_hidden:
        n_hid_blocks = w_hid.shape[0]

        def hid_map(b, l):
            # Clamp: layer 0 pre-fetches hidden block 0 (reused at layer 1),
            # the output layer reuses the already-resident last block => no
            # OOB DMA and no redundant re-fetch.
            idx = jnp.minimum(jnp.maximum(l - 1, 0), n_hid_blocks - 1)
            return (idx, 0, 0)

        in_specs += [
            # One [Hp, Hp] weight per grid step -> double-buffered streaming.
            pl.BlockSpec((1, Hp, Hp), hid_map),
            pl.BlockSpec((1, 1, Hp), hid_map),
        ]
        operands += [w_hid, b_hid]
        est += 2 * Hp * Hp * wbytes + 2 * Hp * 4   # double-buffered hidden block

    in_specs += [
        pl.BlockSpec((Hp, Op), lambda b, l: (0, 0)),
        pl.BlockSpec((1, Op), lambda b, l: (0, 0)),
    ]
    operands += [w_out, b_out]

    return pl.pallas_call(
        kernel,
        out_shape=jax.ShapeDtypeStruct((Bp, Op), jnp.float32),
        grid=(num_b, n_layers),
        in_specs=in_specs,
        # Output block index constant across the layer axis: written only at
        # the final layer, flushed to HBM when the batch tile changes.
        out_specs=pl.BlockSpec((batch_tile, Op), lambda b, l: (b, 0)),
        scratch_shapes=[pltpu.VMEM((batch_tile, Hp), jnp.float32)],
        compiler_params=pltpu.CompilerParams(
            # Batch tiles independent ("parallel" -> shards across v7x's two
            # TensorCores); layer axis carries the activation ("arbitrary").
            dimension_semantics=("parallel", "arbitrary"),
            vmem_limit_bytes=_vmem_limit_bytes(est),
        ),
    )(*operands)


@functools.partial(jax.jit, static_argnames=("n_hidden", "output_size"))
def fnn_forward(x, w_in, b_in, w_hid, b_hid, w_out, b_out, *,
                n_hidden: int, output_size: int):
    """pad -> layer-pipelined fused Pallas kernel -> slice."""
    batch, in_f = x.shape
    Ip = w_in.shape[0]
    # Batch tiling: <=256 rows per tile, multiple of 8 sublanes.
    batch_tile = min(_round_up(max(batch, 1), _SUBLANE), 256)
    Bp = _round_up(max(batch, 1), batch_tile)
    x_pad = (jnp.zeros((Bp, Ip), w_in.dtype)
             .at[:batch, :in_f].set(x.astype(w_in.dtype)))
    y_pad = _fnn_pallas(x_pad, w_in, b_in, w_hid, b_hid, w_out, b_out,
                        batch_tile=batch_tile, n_hidden=n_hidden)
    return y_pad[:batch, :output_size]


class FNNPallas:
    """JAX/Pallas equivalent of the PyTorch FNN module (activation = ReLU)."""

    def __init__(self, input_size, hidden_size, output_size, num_hidden_layers, key):
        self.input_size = input_size
        self.hidden_size = hidden_size
        self.output_size = output_size
        self.num_hidden_layers = num_hidden_layers
        self.n_hidden = num_hidden_layers - 1

        def init_linear(k, out_f, in_f):
            # Deterministic PyTorch-like init: uniform(-1/sqrt(in), 1/sqrt(in)).
            kw, kb = jax.random.split(k)
            bound = 1.0 / float(in_f) ** 0.5
            w = jax.random.uniform(kw, (out_f, in_f), jnp.float32, -bound, bound)
            b = jax.random.uniform(kb, (out_f,), jnp.float32, -bound, bound)
            return w, b

        keys = jax.random.split(key, num_hidden_layers + 1)
        # PyTorch-layout f32 params (kept for the reference check).
        self.fc_input = init_linear(keys[0], hidden_size, input_size)
        self.fc_hidden = [
            init_linear(keys[1 + i], hidden_size, hidden_size)
            for i in range(self.n_hidden)
        ]
        self.fc_output = init_linear(keys[num_hidden_layers], output_size, hidden_size)

        # Kernel-layout params: pre-transposed to [in, out], bf16 weights,
        # output-feature dims zero-padded to 128 lanes (lane-dense stores).
        # Contraction dims need no 128 padding (Mosaic pads K internally);
        # the input feature dim is only rounded to 8 sublanes.
        Ip = _round_up(input_size, _SUBLANE)
        Hp = _round_up(hidden_size, _LANE)
        Op = _round_up(output_size, _LANE)
        wdt = jnp.bfloat16

        def pack_w(w, in_p, out_p):
            out_f, in_f = w.shape
            return (jnp.zeros((in_p, out_p), wdt)
                    .at[:in_f, :out_f].set(w.T.astype(wdt)))

        def pack_b(b, out_p):
            return jnp.zeros((1, out_p), jnp.float32).at[0, :b.shape[0]].set(b)

        w_in = pack_w(self.fc_input[0], Ip, Hp)
        b_in = pack_b(self.fc_input[1], Hp)
        w_out = pack_w(self.fc_output[0], Hp, Op)
        b_out = pack_b(self.fc_output[1], Op)

        if self.n_hidden > 0:
            w_hid = jnp.stack([pack_w(w, Hp, Hp) for (w, _) in self.fc_hidden], 0)
            b_hid = jnp.stack([pack_b(b, Hp)[None] for (_, b) in self.fc_hidden], 0
                              ).reshape(self.n_hidden, 1, Hp)
        else:
            # No dummy operands: a hidden-free pallas_call variant is built.
            w_hid = None
            b_hid = None

        self._params = (w_in, b_in, w_hid, b_hid, w_out, b_out)

    def __call__(self, x):
        w_in, b_in, w_hid, b_hid, w_out, b_out = self._params
        return fnn_forward(x, w_in, b_in, w_hid, b_hid, w_out, b_out,
                           n_hidden=self.n_hidden, output_size=self.output_size)


def _reference_forward(model, x):
    """Pure-JAX reference mirroring the kernel's numerics:
    bf16 weights/activation operands, f32 accumulation, f32 bias/ReLU."""
    hi = jax.lax.Precision.HIGHEST

    def q(a):  # bf16 round-trip, matching the MXU input precision
        return a.astype(jnp.bfloat16).astype(jnp.float32)

    w, b = model.fc_input
    h = jnp.maximum(jnp.dot(q(x), q(w.T), precision=hi) + b, 0.0)
    for w, b in model.fc_hidden:
        h = jnp.maximum(jnp.dot(q(h), q(w.T), precision=hi) + b, 0.0)
    w, b = model.fc_output
    return jnp.dot(q(h), q(w.T), precision=hi) + b


if __name__ == "__main__":
    key = jax.random.PRNGKey(0)
    k_params, k_params2, k_x, k_x2 = jax.random.split(key, 4)

    # Config A: 3 layers total of hidden stack (input + 2 hidden + output).
    input_size, hidden_size, output_size = 16, 32, 8
    num_hidden_layers, batch = 3, 8
    model = FNNPallas(input_size, hidden_size, output_size,
                      num_hidden_layers, k_params)
    x = jax.random.normal(k_x, (batch, input_size), jnp.float32)
    out = jax.block_until_ready(model(x))
    assert out.shape == (batch, output_size)
    ref = _reference_forward(model, x)
    assert jnp.allclose(out, ref, atol=2e-2, rtol=2e-2), \
        f"mismatch A: {jnp.max(jnp.abs(out - ref))}"

    # Config B: num_hidden_layers == 1 (no hidden stack), ragged batch/features.
    model2 = FNNPallas(12, 64, 10, 1, k_params2)
    x2 = jax.random.normal(k_x2, (5, 12), jnp.float32)
    out2 = jax.block_until_ready(model2(x2))
    assert out2.shape == (5, 10)
    ref2 = _reference_forward(model2, x2)
    assert jnp.allclose(out2, ref2, atol=2e-2, rtol=2e-2), \
        f"mismatch B: {jnp.max(jnp.abs(out2 - ref2))}"

    print("KERNEL_OK")
</pallas_src>

<mosaic_0001>
module attributes {stable_mosaic.version = 11 : i64} {
  func.func @_fnn_layer_kernel(%arg0: i32, %arg1: i32, %arg2: memref<8x16xbf16, #tpu.memory_space<vmem>>, %arg3: memref<16x128xbf16, #tpu.memory_space<vmem>>, %arg4: memref<1x128xf32, #tpu.memory_space<vmem>>, %arg5: memref<1x128x128xbf16, #tpu.memory_space<vmem>>, %arg6: memref<1x1x128xf32, #tpu.memory_space<vmem>>, %arg7: memref<128x128xbf16, #tpu.memory_space<vmem>>, %arg8: memref<1x128xf32, #tpu.memory_space<vmem>>, %arg9: memref<8x128xf32, #tpu.memory_space<vmem>>, %arg10: memref<8x128xf32, #tpu.memory_space<vmem>>) attributes {dimension_semantics = [#tpu.dimension_semantics<parallel>, #tpu.dimension_semantics<arbitrary>], iteration_bounds = array<i64: 1, 4>, scalar_prefetch = 0 : i64, scratch_operands = 1 : i64, tpu.core_type = #tpu.core_type<tc>, window_params = [{transform_indices = @transform_0, window_bounds = array<i64: 8, 16>}, {pipeline_mode = #tpu.pipeline_mode<synchronous>, transform_indices = @transform_1, window_bounds = array<i64: 16, 128>}, {pipeline_mode = #tpu.pipeline_mode<synchronous>, transform_indices = @transform_2, window_bounds = array<i64: 1, 128>}, {transform_indices = @transform_3, window_bounds = array<i64: 1, 128, 128>}, {transform_indices = @transform_4, window_bounds = array<i64: 1, 1, 128>}, {pipeline_mode = #tpu.pipeline_mode<synchronous>, transform_indices = @transform_5, window_bounds = array<i64: 128, 128>}, {pipeline_mode = #tpu.pipeline_mode<synchronous>, transform_indices = @transform_6, window_bounds = array<i64: 1, 128>}, {transform_indices = @transform_7, window_bounds = array<i64: 8, 128>}]} {
    %c0_i32 = arith.constant 0 : i32
    %0 = arith.cmpi eq, %arg1, %c0_i32 : i32
    %1 = arith.extui %0 : i1 to i32
    %c0_i32_0 = arith.constant 0 : i32
    %2 = arith.cmpi ne, %1, %c0_i32_0 : i32
    scf.if %2 {
      %c0 = arith.constant 0 : index
      %c0_5 = arith.constant 0 : index
      %11 = vector.load %arg2[%c0, %c0_5] : memref<8x16xbf16, #tpu.memory_space<vmem>>, vector<8x16xbf16>
      %c0_6 = arith.constant 0 : index
      %c0_7 = arith.constant 0 : index
      %12 = vector.load %arg3[%c0_6, %c0_7] : memref<16x128xbf16, #tpu.memory_space<vmem>>, vector<16x128xbf16>
      %cst = arith.constant dense<0.000000e+00> : vector<8x128xf32>
      %13 = tpu.matmul %11, %12, %cst {dimension_numbers = #tpu.dot_dimension_numbers<[1], [0], [0], [1], [0, 0, 1, 1], [], []>} : vector<8x16xbf16>, vector<16x128xbf16>, vector<8x128xf32> -> vector<8x128xf32>
      %c0_8 = arith.constant 0 : index
      %c0_9 = arith.constant 0 : index
      %14 = vector.load %arg4[%c0_8, %c0_9] : memref<1x128xf32, #tpu.memory_space<vmem>>, vector<1x128xf32>
      %15 = vector.broadcast %14 : vector<1x128xf32> to vector<8x128xf32>
      %16 = arith.addf %13, %15 : vector<8x128xf32>
      %cst_10 = arith.constant 0.000000e+00 : f32
      %17 = vector.broadcast %cst_10 : f32 to vector<8x128xf32>
      %18 = arith.maximumf %16, %17 : vector<8x128xf32>
      %c0_11 = arith.constant 0 : index
      %c0_12 = arith.constant 0 : index
      %19 = vector.load %arg10[%c0_11, %c0_12] : memref<8x128xf32, #tpu.memory_space<vmem>>, vector<8x128xf32>
      tpu.vector_store %arg10[%c0_11, %c0_12], %18 {strides = array<i32>} : memref<8x128xf32, #tpu.memory_space<vmem>>, vector<8x128xf32>,
    } else {
    }
    %c0_i32_1 = arith.constant 0 : i32
    %3 = arith.cmpi sgt, %arg1, %c0_i32_1 : i32
    %c3_i32 = arith.constant 3 : i32
    %4 = arith.cmpi slt, %arg1, %c3_i32 : i32
    %5 = arith.andi %3, %4 : i1
    %6 = arith.extui %5 : i1 to i32
    %c0_i32_2 = arith.constant 0 : i32
    %7 = arith.cmpi ne, %6, %c0_i32_2 : i32
    scf.if %7 {
      %c0 = arith.constant 0 : index
      %c0_5 = arith.constant 0 : index
      %11 = vector.load %arg10[%c0, %c0_5] : memref<8x128xf32, #tpu.memory_space<vmem>>, vector<8x128xf32>
      %12 = arith.truncf %11 : vector<8x128xf32> to vector<8x128xbf16>
      %c0_6 = arith.constant 0 : index
      %c0_7 = arith.constant 0 : index
      %c0_8 = arith.constant 0 : index
      %13 = vector.load %arg5[%c0_6, %c0_7, %c0_8] : memref<1x128x128xbf16, #tpu.memory_space<vmem>>, vector<1x128x128xbf16>
      %14 = vector.shape_cast %13 : vector<1x128x128xbf16> to vector<128x128xbf16>
      %cst = arith.constant dense<0.000000e+00> : vector<8x128xf32>
      %15 = tpu.matmul %12, %14, %cst {dimension_numbers = #tpu.dot_dimension_numbers<[1], [0], [0], [1], [0, 0, 1, 1], [], []>} : vector<8x128xbf16>, vector<128x128xbf16>, vector<8x128xf32> -> vector<8x128xf32>
      %c0_9 = arith.constant 0 : index
      %c0_10 = arith.constant 0 : index
      %c0_11 = arith.constant 0 : index
      %16 = vector.load %arg6[%c0_9, %c0_10, %c0_11] : memref<1x1x128xf32, #tpu.memory_space<vmem>>, vector<1x1x128xf32>
      %17 = vector.shape_cast %16 : vector<1x1x128xf32> to vector<1x128xf32>
      %18 = vector.broadcast %17 : vector<1x128xf32> to vector<8x128xf32>
      %19 = arith.addf %15, %18 : vector<8x128xf32>
      %cst_12 = arith.constant 0.000000e+00 : f32
      %20 = vector.broadcast %cst_12 : f32 to vector<8x128xf32>
      %21 = arith.maximumf %19, %20 : vector<8x128xf32>
      %c0_13 = arith.constant 0 : index
      %c0_14 = arith.constant 0 : index
      %22 = vector.load %arg10[%c0_13, %c0_14] : memref<8x128xf32, #tpu.memory_space<vmem>>, vector<8x128xf32>
      tpu.vector_store %arg10[%c0_13, %c0_14], %21 {strides = array<i32>} : memref<8x128xf32, #tpu.memory_space<vmem>>, vector<8x128xf32>,
    } else {
    }
    %c3_i32_3 = arith.constant 3 : i32
    %8 = arith.cmpi eq, %arg1, %c3_i32_3 : i32
    %9 = arith.extui %8 : i1 to i32
    %c0_i32_4 = arith.constant 0 : i32
    %10 = arith.cmpi ne, %9, %c0_i32_4 : i32
    scf.if %10 {
      %c0 = arith.constant 0 : index
      %c0_5 = arith.constant 0 : index
      %11 = vector.load %arg10[%c0, %c0_5] : memref<8x128xf32, #tpu.memory_space<vmem>>, vector<8x128xf32>
      %12 = arith.truncf %11 : vector<8x128xf32> to vector<8x128xbf16>
      %c0_6 = arith.constant 0 : index
      %c0_7 = arith.constant 0 : index
      %13 = vector.load %arg7[%c0_6, %c0_7] : memref<128x128xbf16, #tpu.memory_space<vmem>>, vector<128x128xbf16>
      %cst = arith.constant dense<0.000000e+00> : vector<8x128xf32>
      %14 = tpu.matmul %12, %13, %cst {dimension_numbers = #tpu.dot_dimension_numbers<[1], [0], [0], [1], [0, 0, 1, 1], [], []>} : vector<8x128xbf16>, vector<128x128xbf16>, vector<8x128xf32> -> vector<8x128xf32>
      %c0_8 = arith.constant 0 : index
      %c0_9 = arith.constant 0 : index
      %15 = vector.load %arg8[%c0_8, %c0_9] : memref<1x128xf32, #tpu.memory_space<vmem>>, vector<1x128xf32>
      %16 = vector.broadcast %15 : vector<1x128xf32> to vector<8x128xf32>
      %17 = arith.addf %14, %16 : vector<8x128xf32>
      %c0_10 = arith.constant 0 : index
      %c0_11 = arith.constant 0 : index
      %18 = vector.load %arg9[%c0_10, %c0_11] : memref<8x128xf32, #tpu.memory_space<vmem>>, vector<8x128xf32>
      tpu.vector_store %arg9[%c0_10, %c0_11], %17 {strides = array<i32>} : memref<8x128xf32, #tpu.memory_space<vmem>>, vector<8x128xf32>,
    } else {
    }
    return
  }
  func.func @transform_0(%arg0: i32, %arg1: i32) -> (i32, i32) {
    %c0_i32 = arith.constant 0 : i32
    %c0_i32_0 = arith.constant 0 : i32
    return %arg0, %c0_i32 : i32, i32
  }
  func.func @transform_1(%arg0: i32, %arg1: i32) -> (i32, i32) {
    %c0_i32 = arith.constant 0 : i32
    %c0_i32_0 = arith.constant 0 : i32
    %c0_i32_1 = arith.constant 0 : i32
    return %c0_i32, %c0_i32_0 : i32, i32
  }
  func.func @transform_2(%arg0: i32, %arg1: i32) -> (i32, i32) {
    %c0_i32 = arith.constant 0 : i32
    %c0_i32_0 = arith.constant 0 : i32
    %c0_i32_1 = arith.constant 0 : i32
    return %c0_i32, %c0_i32_0 : i32, i32
  }
  func.func @transform_3(%arg0: i32, %arg1: i32) -> (i32, i32, i32) {
    %c1_i32 = arith.constant 1 : i32
    %0 = arith.subi %arg1, %c1_i32 : i32
    %c0_i32 = arith.constant 0 : i32
    %1 = arith.maxsi %0, %c0_i32 : i32
    %c1_i32_0 = arith.constant 1 : i32
    %2 = arith.minsi %1, %c1_i32_0 : i32
    %c0_i32_1 = arith.constant 0 : i32
    %c0_i32_2 = arith.constant 0 : i32
    %c0_i32_3 = arith.constant 0 : i32
    return %2, %c0_i32_1, %c0_i32_2 : i32, i32, i32
  }
  func.func @transform_4(%arg0: i32, %arg1: i32) -> (i32, i32, i32) {
    %c1_i32 = arith.constant 1 : i32
    %0 = arith.subi %arg1, %c1_i32 : i32
    %c0_i32 = arith.constant 0 : i32
    %1 = arith.maxsi %0, %c0_i32 : i32
    %c1_i32_0 = arith.constant 1 : i32
    %2 = arith.minsi %1, %c1_i32_0 : i32
    %c0_i32_1 = arith.constant 0 : i32
    %c0_i32_2 = arith.constant 0 : i32
    %c0_i32_3 = arith.constant 0 : i32
    return %2, %c0_i32_1, %c0_i32_2 : i32, i32, i32
  }
  func.func @transform_5(%arg0: i32, %arg1: i32) -> (i32, i32) {
    %c0_i32 = arith.constant 0 : i32
    %c0_i32_0 = arith.constant 0 : i32
    %c0_i32_1 = arith.constant 0 : i32
    return %c0_i32, %c0_i32_0 : i32, i32
  }
  func.func @transform_6(%arg0: i32, %arg1: i32) -> (i32, i32) {
    %c0_i32 = arith.constant 0 : i32
    %c0_i32_0 = arith.constant 0 : i32
    %c0_i32_1 = arith.constant 0 : i32
    return %c0_i32, %c0_i32_0 : i32, i32
  }
  func.func @transform_7(%arg0: i32, %arg1: i32) -> (i32, i32) {
    %c0_i32 = arith.constant 0 : i32
    %c0_i32_0 = arith.constant 0 : i32
    return %arg0, %c0_i32 : i32, i32
  }
}

</mosaic_0001>

<bundles_post_ra>
// kernel: fnn_forward.1
= control target key start
LH: loop header
LB: loop body
LE: loop exit
PB: predicated region body
PF: predicated region fallthrough
CT: control target
= control target key end

     0   :  { %s1310_s0 = inlined_call_operand.vmem [shape: bf16[8,16], index: 0, kind: input, shape index: {}]   ;;  %s1311_s1 = inlined_call_operand.vmem [shape: bf16[16,128], index: 1, kind: input, shape index: {}]   ;;  %s1312_s2 = inlined_call_operand.vmem [shape: f32[1,128], index: 2, kind: input, shape index: {}]   ;;  %s1313_s3 = inlined_call_operand.hbm [shape: bf16[2,128,128], index: 3, kind: input, shape index: {}]   ;;  %s1314_s4 = inlined_call_operand.vmem [shape: f32[2,1,128], index: 4, kind: input, shape index: {}]   ;;  %s1315_s5 = inlined_call_operand.hbm [shape: bf16[128,128], index: 5, kind: input, shape index: {}]   ;;  %s1316_s6 = inlined_call_operand.vmem [shape: f32[1,128], index: 6, kind: input, shape index: {}]   ;;  %s1317_s7 = inlined_call_operand.hbm [shape: f32[8,128], index: 7, kind: output, shape index: {}]  }
   0x1   :  { %1323 = sst [smem:[#allocation14_spill]] %s1315_s5 }
   0x2   :  { %12 = vsyncpa [#allocation4], 0 }
   0x3   :  { %14 = vsyncpa [#allocation4 + $0x1], 0 }
   0x4   :  { %15 = vsyncpa [#allocation7], 0 }
   0x5   :  { %16 = vsyncpa [#allocation5], 0  ;;  %s1151_s24 = smov 0   ;;  %s1153_s25 = smov 0  }
   0x6   :  { %s1155_s26 = smov 0   ;;  %s1157_s27 = smov 0  }
   0x7   :  { %s1159_s28 = smov 0   ;;  %s1161_s29 = smov 0  }
   0x8 LB: > { %1324 = sst [smem:[#allocation12_spill]] %s1101_s28  ;;  %s1318_s30 = sadd.s32 4294967295, %s1105_s29   ;;  %s1105_s29 = sphi %s1161_s29, %s22_s29   ;;  %s1101_s28 = sphi %s1159_s28, %s1335_s28   ;;  %s1097_s27 = sphi %s1157_s27, %s1334_s27   ;;  %s1093_s26 = sphi %s1155_s26, %s1338_s26   ;;  %s1089_s25 = sphi %s1153_s25, %s1337_s25   ;;  %s1085_s24 = sphi %s1151_s24, %s1336_s24  }
   0x9   : > { %p132_p0 = scmp.ne.s32.totalorder %s1089_s25, %s1085_s24  ;;  %p1183_p1 = scmp.eq.s32.totalorder %s1318_s30, 0 }
   0xa   : > { %p754_p2 = scmp.ge.s32.totalorder %s1105_s29, 1  ;;  %p247_p3 = scmp.lt.s32.totalorder %s1105_s29, 5 }
   0xb   : > { %p1191_p4 = por %p1183_p1, %p132_p0  ;;  %s1327_s5 = sld [smem:[#allocation14_spill]] }
   0xc   : > { %p1198_p5 = pnand %p754_p2, %p247_p3  ;;  %s1107_s14 = smov [#allocation6]  }
   0xd   : > { %s273_s15 = sshll.u32 %s1107_s14, 4  ;;  %s1319_s16 = smov 64   ;;  %s274_s15 = int_to_ptr.vmem [resolvable:$true] %s273_s15 }
   0xe   : > { %p891_p6 = pneg %p1198_p5  ;;  %s1320_s17 = smov 4  }
   0xf   : > { %s31_s18 = sadd.s32 1, %s1101_s28  ;;  %s730_s19 = sadd.s32 4294967295, %s1101_s28 }
  0x10   : > { %p892_p7 = pnand %p891_p6, %p1183_p1  ;;  %p32_p8 = scmp.ge.s32.totalorder %s31_s18, 4 }
  0x11   : > { %s271_s12 = sshll.u32 %s1327_s5, 4  ;;  %p107_p9 = scmp.gt.s32.totalorder %s730_s19, 0  ;;  %s272_s12 = int_to_ptr.hbm [resolvable:$true] %s271_s12 }
  0x12   : > { %894 = dma.hbm_to_vmem [thread:$0]  (!%p892_p7), %s272_s12, 1024, %s274_s15, [#allocation7], %s1319_s16, %s1319_s16, %s1320_s17  }
  0x13   : > { %p731_p10 = scmp.lt.s32.totalorder %s730_s19, 1  ;;  %s1340_s18 = smov (%p32_p8, %s31_s18), 0 }
  0x14   : > { %1329 = sst [smem:[#allocation13_spill]] %s1340_s18  ;;  %s1342_s19 = smov (!%p107_p9, %s730_s19), 0 }
  0x15   : > { %s736_s20 = sadd.s32 4294967295, %s1340_s18  ;;  %s1344_s19 = smov (!%p731_p10, %s1342_s19), 1 }
  0x16   : > { %p112_p11 = scmp.gt.s32.totalorder %s736_s20, 0  ;;  %p737_p12 = scmp.lt.s32.totalorder %s736_s20, 1 }
  0x17   : > { %p126_p13 = scmp.ne.s32.totalorder %s1093_s26, %s1089_s25  ;;  %p127_p0 = scmp.eq.s32.totalorder %s1105_s29, 0 }
  0x18   : > { %s1346_s20 = smov (!%p112_p11, %s736_s20), 0  ;;  %s119_s21 = sadd.s32 1, %s1093_s26 }
  0x19   : > { %p1218_p2 = por %p127_p0, %p126_p13  ;;  %s1348_s20 = smov (!%p737_p12, %s1346_s20), 1 }
  0x1a   : > { %s290_s23 = sand.u32 1, %s1093_s26   ;;  %s861_s24 = sshll.u32 %s1344_s19, 6 }
  0x1b   : > { %s116_s10 = ssub.s32 %s1344_s19, %s1348_s20  ;;  %p900_p3 = scmp.lt.s32.totalorder %s1105_s29, 4 }
  0x1c   : > { %p117_p6 = scmp.eq.s32.totalorder %s116_s10, 0  ;;  %s758_s11 = sshll.u32 %s290_s23, 6 }
  0x1d   : > { %s304_s15 = scalar_lea.hbm %s1313_s3, %s861_s24  ;;  %s294_s17 = scalar_lea.vmem [#allocation3], %s758_s11 }
  0x1e   : > { %s1228_s30 = scalar_select %p117_p6, %s1093_s26, %s119_s21  }
  0x1f   : > { %s305_s16 = sshll.u32 %s304_s15, 4  ;;  %s307_s5 = sshll.u32 %s294_s17, 4  ;;  %s306_s16 = int_to_ptr.hbm [resolvable:$true] %s305_s16  ;;  %s308_s5 = int_to_ptr.vmem [resolvable:$true] %s307_s5 }
  0x20   : > { %p896_p7 = pnand %p900_p3, %p1218_p2  ;;  %s291_s18 = scalar_lea.sflag [#allocation4], %s290_s23 }
  0x21   : > { %s989_s28 = sshra.s32 %s306_s16, 4  ;;  %s996_s21 = scalar_lea.hbm %s1313_s3, 128  ;;  %s990_s28 = int_to_ptr.hbm [resolvable:$true] %s989_s28 }
  0x22   : > { %s991_s19 = scalar_lea.hbm %s990_s28, 64  ;;  %p993_p9 = pneg %p896_p7 }
  0x23   : > { %p992_p8 = scmp.ne.s32.totalorder %s990_s28, %s991_s19  ;;  %p998_p12 = scmp.lt.s32.totalorder %s996_s21, %s991_s19 }
  0x25   : > { %p994_p10 = pnand %p993_p9, %p992_p8 }
  0x27   : > { %p995_p11 = pneg %p994_p10 }
  0x29   : > { %p1000_p13 = pnand %p998_p12, %p995_p11 }
  0x2b   : > { %1003 = shalt.err (!%p1000_p13)
}
  0x2c   : > { %s1331_s17 = smov 4   ;;  %s1332_s24 = smov 64  }
  0x2d   : > { %898 = dma.hbm_to_vmem [thread:$0]  (!%p896_p7), %s306_s16, 1024, %s308_s5, %s291_s18, %s1332_s24, %s1332_s24, %s1331_s17  }
  0x2e   : > { %335 = sbr.rel (%p1198_p5) target bundleno = 555 (0x22b), region = 48  ;;  %s337_s28 = sand.u32 (!%p1198_p5), 1, %s1089_s25  }
  0x2f   : > { %s768_s22 = sshll.u32 (!%p1198_p5), %s337_s28, 6  ;;  %s338_s23 = scalar_lea.sflag (!%p1198_p5), [#allocation4], %s337_s28 }
  0x30   : > { %s1241_s11 = scalar_lea.vmem (!%p1198_p5), [#allocation3], %s768_s22 }
  0x33   : > { %1072 = dma.done.wait (%p1191_p4), %s338_s23, 1024  }
  0x34   : > { %1074 = vsyncadd (%p1191_p4), %s338_s23, 4294966272 }
  0x35   : > { %1076 = dma.done.wait (%p1183_p1), [#allocation7], 1024  }
  0x36   : > { %1078 = vsyncadd (%p1183_p1), [#allocation7], 4294966272  ;;  %s770_s5 = sadd.s32 4294967295, %s1097_s27  ;;  %p776_p4 = scmp.ne.s32.totalorder %s1097_s27, 0 }
  0x37   : > { %p395_p5 = scmp.gt.s32.totalorder %s770_s5, 0  ;;  %p771_p0 = scmp.lt.s32.totalorder %s770_s5, 1 }
  0x39   : > { %s1350_s5 = smov (!%p395_p5, %s770_s5), 0 }
  0x3a   : > { %s1352_s5 = smov (!%p771_p0, %s1350_s5), 1  ;;  %411 = sbr.rel (%p776_p4) target bundleno = 201 (0xc9), region = 60 }
  0x3b   : > { %p399_p2 = scmp.lt.s32.totalorder %s1352_s5, 1 }
  0x3d   : > { %s1354_s5 = smov (!%p399_p2, %s1352_s5), 1 }
  0x3e   : > { %s401_s9 = scalar_lea.vmem %s1314_s4, %s1354_s5 }
  0x3f   : > { %v864_v0 = vld [vmem:[%s1311_s1] sm:$0xff]  ;;  %vm425_vm0 = vcmask 130048  }
  0x40   : > { %436 = vmatpush.bf16.msra.mxu0 %v864_v0  ;;  %v412_v1 = vld [vmem:[%s1310_s0] sm:$0xf] }
  0x41   : > { %v956_v2 = vld [vmem:[%s1312_s2] ss:$0 sm:$0xff] }
  0x43   : > { %781 = vmatmul.msk.bf16.vlgmr.msra.gmra.mxu0 %vm425_vm0, %v412_v1 }
  0xc0   : > { %v438_v3 = vpop.f32.mrf.mxu0 }
  0xc1   : > { %v439_v4 = vadd.f32 %v956_v2, %v438_v3 }
  0xc3   : > { %v442_v5 = vmax.f32 %v439_v4, 0.0 }
  0xc5   : > { %443 = vst [vmem:[#allocation2] sm:$0xff] %v442_v5 }
  0xc8   : > { %v440_v6 = vpop.f32.mrf.mxu0 }
  0xc9 PF: > { %p444_p1 = scmp.gt.s32.totalorder %s1097_s27, 0  ;;  %p445_p3 = scmp.lt.s32.totalorder %s1097_s27, 3 }
  0xcb   : > { %p446_p6 = pnand %p445_p3, %p444_p1 }
  0xcd   : > { %449 = sbr.rel (%p446_p6) target bundleno = 376 (0x178), region = 64 }
  0xd2   : > { %v872_v7 = vld [vmem:[%s1241_s11 + $0x38] sm:$0xff]  ;;  %v871_v8 = vld [vmem:[%s1241_s11 + $0x30] sm:$0xff]  ;;  %v870_v9 = vld [vmem:[%s1241_s11 + $0x28] sm:$0xff] }
  0xd3   : > { %520 = vmatpush.bf16.msra.mxu0 %v872_v7  ;;  %v869_v10 = vld [vmem:[%s1241_s11 + $0x20] sm:$0xff]  ;;  %v868_v11 = vld [vmem:[%s1241_s11 + $0x18] sm:$0xff]  ;;  %v867_v12 = vld [vmem:[%s1241_s11 + $0x10] sm:$0xff] }
  0xd4   : > { %v866_v13 = vld [vmem:[%s1241_s11 + $0x8] sm:$0xff]  ;;  %v865_v14 = vld [vmem:[%s1241_s11] sm:$0xff]  ;;  %v450_v15 = vld [vmem:[#allocation2] sm:$0xff] }
  0xd5   : > { %v451_v16 = vpack.c.bf16 %v450_v15, %v450_v15  ;;  %v957_v17 = vld [vmem:[%s401_s9] ss:$0 sm:$0xff] }
  0xd7   : > { %521 = vmatpush.bf16.msra.mxu0 %v871_v8 }
  0xdb   : > { %522 = vmatpush.bf16.msra.mxu0 %v870_v9 }
  0xdf   : > { %523 = vmatpush.bf16.msra.mxu0 %v869_v10 }
  0xe3   : > { %524 = vmatpush.bf16.msra.mxu0 %v868_v11 }
  0xe7   : > { %525 = vmatpush.bf16.msra.mxu0 %v867_v12 }
  0xeb   : > { %526 = vmatpush.bf16.msra.mxu0 %v866_v13 }
  0xef   : > { %527 = vmatpush.bf16.msra.mxu0 %v865_v14 }
  0xf2   : > { %528 = vmatmul.bf16.vlgmr.msra.gmra.mxu0 %v451_v16 }
 0x16f   : > { %v529_v18 = vpop.f32.mrf.mxu0 }
 0x170   : > { %v530_v19 = vadd.f32 %v957_v17, %v529_v18 }
 0x172   : > { %v533_v20 = vmax.f32 %v530_v19, 0.0 }
 0x174   : > { %534 = vst [vmem:[#allocation2] sm:$0xff] %v533_v20 }
 0x177   : > { %v531_v21 = vpop.f32.mrf.mxu0 }
 0x178 PF: > { %p814_p7 = scmp.ne.s32.totalorder %s1097_s27, 3 }
 0x17a   : > { %538 = sbr.rel (%p814_p7) target bundleno = 549 (0x225), region = 68 }
 0x17f   : > { %v880_v22 = vld [vmem:[#allocation6 + $0x38] sm:$0xff]  ;;  %v879_v23 = vld [vmem:[#allocation6 + $0x30] sm:$0xff]  ;;  %v878_v24 = vld [vmem:[#allocation6 + $0x28] sm:$0xff] }
 0x180   : > { %609 = vmatpush.bf16.msra.mxu0 %v880_v22  ;;  %v877_v25 = vld [vmem:[#allocation6 + $0x20] sm:$0xff]  ;;  %v876_v26 = vld [vmem:[#allocation6 + $0x18] sm:$0xff]  ;;  %v875_v27 = vld [vmem:[#allocation6 + $0x10] sm:$0xff] }
 0x181   : > { %v874_v28 = vld [vmem:[#allocation6 + $0x8] sm:$0xff]  ;;  %v873_v29 = vld [vmem:[#allocation6] sm:$0xff]  ;;  %v539_v30 = vld [vmem:[#allocation2] sm:$0xff] }
 0x182   : > { %v540_v31 = vpack.c.bf16 %v539_v30, %v539_v30  ;;  %v958_v32 = vld [vmem:[%s1316_s6] ss:$0 sm:$0xff] }
 0x184   : > { %610 = vmatpush.bf16.msra.mxu0 %v879_v23 }
 0x188   : > { %611 = vmatpush.bf16.msra.mxu0 %v878_v24 }
 0x18c   : > { %612 = vmatpush.bf16.msra.mxu0 %v877_v25 }
 0x190   : > { %613 = vmatpush.bf16.msra.mxu0 %v876_v26 }
 0x194   : > { %614 = vmatpush.bf16.msra.mxu0 %v875_v27 }
 0x198   : > { %615 = vmatpush.bf16.msra.mxu0 %v874_v28 }
 0x19c   : > { %616 = vmatpush.bf16.msra.mxu0 %v873_v29 }
 0x19f   : > { %617 = vmatmul.bf16.vlgmr.msra.gmra.mxu0 %v540_v31 }
 0x21c   : > { %v618_v33 = vpop.f32.mrf.mxu0 }
 0x21d   : > { %v619_v34 = vadd.f32 %v958_v32, %v618_v33 }
 0x21f   : > { %622 = vst [vmem:[#allocation8] sm:$0xff] %v619_v34 }
 0x224   : > { %v620_v35 = vpop.f32.mrf.mxu0 }
 0x225 PF: > { %s1333_s17 = sadd.s32 4294967295, %s1105_s29   ;;  %s633_s22 = sshll.u32 %s1317_s7, 4  ;;  %s634_s22 = int_to_ptr.hbm [resolvable:$true] %s633_s22 }
 0x226   : > { %p902_p8 = scmp.eq.s32.totalorder %s1333_s17, 3  ;;  %s1110_s23 = smov [#allocation8]  }
 0x227   : > { %s631_s11 = sshll.u32 %s1110_s23, 4  ;;  %s632_s11 = int_to_ptr.vmem [resolvable:$true] %s631_s11 }
 0x228   : > { %888 = dma.vmem_to_hbm [thread:$0]  (%p902_p8), %s632_s11, 128, %s634_s22, [#allocation5]  }
 0x229   : > { %1080 = dma.done.wait (%p902_p8), [#allocation5], 128  }
 0x22a   : > { %1082 = vsyncadd (%p902_p8), [#allocation5], 4294967168 }
 0x22b PF: > { %s22_s29 = sadd.s32 1, %s1105_s29   ;;  %s1334_s27 = sld [smem:[#allocation12_spill]] }
 0x22c   : > { %p19_p9 = scmp.ge.s32.totalorder %s22_s29, 6   ;;  %s1335_s28 = sld [smem:[#allocation13_spill]] }
 0x22d   : > { %s1336_s24 = smov %s1089_s25  ;;  %s1337_s25 = smov %s1093_s26 }
 0x22e   : > { %s1338_s26 = smov %s1228_s30  ;;  %21 = sbr.rel (!%p19_p9) target bundleno = 8 (0x8), region = 108 }
 0x233   :  { %647 = vsyncpa [#allocation4], 1 }
 0x234   :  { %649 = vsyncpa [#allocation4 + $0x1], 1 }
 0x235   :  { %650 = vsyncpa [#allocation7], 1 }
 0x236   :  { %651 = vsyncpa [#allocation5], 1 }
 0x237   :  { %653 = vsyncpa [#allocation5 + $0x1], 1 }

</bundles_post_ra>
